<compile_context>
chip_gen: v7x
topology: tpu7x:2x2x1
jax: 0.10.0
libtpu: 0.0.40
codegen_flags: <defaults>
</compile_context>

<pallas_src>
import math
from functools import partial

import jax
import jax.numpy as jnp
from jax.experimental import pallas as pl
from jax.experimental.pallas import tpu as pltpu

LN_EPS = 1e-5          # PyTorch nn.LayerNorm default
NEG_INF = -1e30        # causal-mask fill (avoids inf arithmetic inside the kernel)


# ----------------------------- in-kernel math helpers -----------------------------

def _gelu(x):
    # TODO(synk): PyTorch nn.GELU default is erf-based; tanh approximation is used here
    # because lax.erf has no guaranteed Mosaic lowering (max abs deviation ~1e-3).
    c = math.sqrt(2.0 / math.pi)
    return 0.5 * x * (1.0 + jnp.tanh(c * (x + 0.044715 * x * x * x)))


def _layernorm(x, g, b):
    mu = jnp.mean(x, axis=-1, keepdims=True)
    var = jnp.mean(jnp.square(x - mu), axis=-1, keepdims=True)
    return (x - mu) * jax.lax.rsqrt(var + LN_EPS) * g + b


def _pick_tile(dim, target, align):
    """Largest multiple of `align` that divides `dim` and is <= target, else full dim."""
    if dim <= target:
        return dim
    t = (target // align) * align
    while t >= align:
        if dim % t == 0:
            return t
        t -= align
    return dim


# ----------------------------------- kernels --------------------------------------

def _ln_matmul_kernel(x_ref, g_ref, b_ref, w_ref, bias_ref, o_ref, *, activation):
    """y = act(layernorm(x) @ W + bias); LN/GELU in f32, matmul in W's dtype."""
    x = x_ref[...].astype(jnp.float32)
    xl = _layernorm(x, g_ref[...], b_ref[...])
    y = jnp.dot(xl.astype(w_ref.dtype), w_ref[...], preferred_element_type=jnp.float32)
    y = y + bias_ref[...].astype(jnp.float32)
    if activation == "gelu":
        y = _gelu(y)
    o_ref[...] = y.astype(o_ref.dtype)


def _matmul_kernel(*refs, has_bias, has_res):
    """y = x @ W [+ bias] [+ residual], K-reduction grid axis, f32 VMEM accumulator."""
    x_ref, w_ref = refs[0], refs[1]
    i = 2
    bias_ref = res_ref = None
    if has_bias:
        bias_ref = refs[i]; i += 1
    if has_res:
        res_ref = refs[i]; i += 1
    o_ref, acc_ref = refs[i], refs[i + 1]

    @pl.when(pl.program_id(2) == 0)
    def _():
        acc_ref[...] = jnp.zeros_like(acc_ref)

    acc_ref[...] += jnp.dot(x_ref[...], w_ref[...], preferred_element_type=jnp.float32)

    @pl.when(pl.program_id(2) == pl.num_programs(2) - 1)
    def _():
        y = acc_ref[...]
        if has_bias:
            y = y + bias_ref[...].astype(jnp.float32)
        if has_res:
            y = y + res_ref[...].astype(jnp.float32)
        o_ref[...] = y.astype(o_ref.dtype)


def _attention_kernel(q_ref, k_ref, v_ref, o_ref, *, causal):
    """Softmax attention for one (batch, head); scale already folded into q."""
    q = q_ref[0, 0]                      # (T, hd)
    k = k_ref[0, 0]                      # (S, hd)
    v = v_ref[0, 0]                      # (S, hd)
    s = jax.lax.dot_general(q, k, (((1,), (1,)), ((), ())),
                            preferred_element_type=jnp.float32)      # (T, S)
    if causal:
        T, S = s.shape
        row = jax.lax.broadcasted_iota(jnp.int32, (T, S), 0)
        col = jax.lax.broadcasted_iota(jnp.int32, (T, S), 1)
        s = jnp.where(col <= row, s, jnp.float32(NEG_INF))
    m = jnp.max(s, axis=-1, keepdims=True)
    p = jnp.exp(s - m)
    denom = jnp.sum(p, axis=-1, keepdims=True)
    p = p * pl.reciprocal(denom, approx=True)
    o = jnp.dot(p.astype(v.dtype), v, preferred_element_type=jnp.float32)
    o_ref[0, 0] = o.astype(o_ref.dtype)
    # TODO(synk): for very long cross-attention contexts, add a KV grid axis with an
    # online-softmax accumulator (flash-style) instead of full (T, S) logits per head.


def _ln_kernel(x_ref, g_ref, b_ref, o_ref):
    x = x_ref[...].astype(jnp.float32)
    o_ref[...] = _layernorm(x, g_ref[...], b_ref[...]).astype(o_ref.dtype)


# ------------------------------- pallas_call wrappers ------------------------------

def ln_matmul(x, g, b, w, bias, *, activation=None, out_dtype=jnp.float32,
              row_tile=256, col_tile=512):
    M, K = x.shape
    _, N = w.shape
    TM = _pick_tile(M, row_tile, 8)
    TN = _pick_tile(N, col_tile, 128)
    return pl.pallas_call(
        partial(_ln_matmul_kernel, activation=activation),
        out_shape=jax.ShapeDtypeStruct((M, N), out_dtype),
        grid=(M // TM, N // TN),
        in_specs=[
            pl.BlockSpec((TM, K), lambda i, j: (i, 0)),
            pl.BlockSpec((1, K), lambda i, j: (0, 0)),
            pl.BlockSpec((1, K), lambda i, j: (0, 0)),
            pl.BlockSpec((K, TN), lambda i, j: (0, j)),
            pl.BlockSpec((1, TN), lambda i, j: (0, j)),
        ],
        out_specs=pl.BlockSpec((TM, TN), lambda i, j: (i, j)),
        compiler_params=pltpu.CompilerParams(
            dimension_semantics=("parallel", "parallel")),
    )(x, g, b, w, bias)


def matmul(x, w, *, bias=None, residual=None, out_dtype=jnp.float32, mm_dtype=None,
           row_tile=256, col_tile=512, k_tile=512):
    if mm_dtype is not None:
        x = x.astype(mm_dtype)
    M, K = x.shape
    _, N = w.shape
    TM = _pick_tile(M, row_tile, 8)
    TN = _pick_tile(N, col_tile, 128)
    TK = _pick_tile(K, k_tile, 128)
    in_specs = [pl.BlockSpec((TM, TK), lambda i, j, k: (i, k)),
                pl.BlockSpec((TK, TN), lambda i, j, k: (k, j))]
    args = [x, w]
    if bias is not None:
        in_specs.append(pl.BlockSpec((1, TN), lambda i, j, k: (0, j)))
        args.append(bias)
    if residual is not None:
        in_specs.append(pl.BlockSpec((TM, TN), lambda i, j, k: (i, j)))
        args.append(residual)
    return pl.pallas_call(
        partial(_matmul_kernel, has_bias=bias is not None, has_res=residual is not None),
        out_shape=jax.ShapeDtypeStruct((M, N), out_dtype),
        grid=(M // TM, N // TN, K // TK),
        in_specs=in_specs,
        out_specs=pl.BlockSpec((TM, TN), lambda i, j, k: (i, j)),
        scratch_shapes=[pltpu.VMEM((TM, TN), jnp.float32)],
        compiler_params=pltpu.CompilerParams(
            dimension_semantics=("parallel", "parallel", "arbitrary")),
    )(*args)


def attention(q, k, v, *, causal, out_dtype):
    """q: (B, H, T, hd), k/v: (B, H, S, hd) -> (B, H, T, hd)."""
    B, H, T, hd = q.shape
    S = k.shape[2]
    q_spec = pl.BlockSpec((1, 1, T, hd), lambda b, h: (b, h, 0, 0))
    kv_spec = pl.BlockSpec((1, 1, S, hd), lambda b, h: (b, h, 0, 0))
    out_spec = pl.BlockSpec((1, 1, T, hd), lambda b, h: (b, h, 0, 0))
    return pl.pallas_call(
        partial(_attention_kernel, causal=causal),
        out_shape=jax.ShapeDtypeStruct((B, H, T, hd), out_dtype),
        grid=(B, H),
        in_specs=[q_spec, kv_spec, kv_spec],
        out_specs=out_spec,
        compiler_params=pltpu.CompilerParams(
            dimension_semantics=("parallel", "parallel")),
    )(q, k, v)


def layernorm(x, g, b, *, out_dtype=jnp.float32, row_tile=256):
    M, D = x.shape
    TM = _pick_tile(M, row_tile, 8)
    return pl.pallas_call(
        _ln_kernel,
        out_shape=jax.ShapeDtypeStruct((M, D), out_dtype),
        grid=(M // TM,),
        in_specs=[pl.BlockSpec((TM, D), lambda i: (i, 0)),
                  pl.BlockSpec((1, D), lambda i: (0, 0)),
                  pl.BlockSpec((1, D), lambda i: (0, 0))],
        out_specs=pl.BlockSpec((TM, D), lambda i: (i, 0)),
        compiler_params=pltpu.CompilerParams(dimension_semantics=("parallel",)),
    )(x, g, b)


# ------------------------------------ forward --------------------------------------

def text_decoder_forward(tokens, xa, pk, n_head, mm_dtype=jnp.bfloat16):
    """tokens: (B, T) int32; xa: (B, S, n_state) encoded audio features -> (B, T, V)."""
    B, T = tokens.shape
    _, S, D = xa.shape
    H = n_head
    hd = D // H

    # token embedding + positional embedding (gather is plain-JAX glue)
    x = jnp.take(pk['tok_emb'], tokens, axis=0) + pk['pos_emb'][None, :T]
    x2 = x.astype(jnp.float32).reshape(B * T, D)       # residual stream stays f32
    xa2 = xa.reshape(B * S, D).astype(mm_dtype)

    for bp in pk['blocks']:
        # ---- self attention (causal) ----
        qkv = ln_matmul(x2, bp['ln1_g'], bp['ln1_b'], bp['wqkv'], bp['bqkv'],
                        activation=None, out_dtype=mm_dtype)
        qkv = qkv.reshape(B, T, 3, H, hd)
        q = qkv[:, :, 0].transpose(0, 2, 1, 3)
        k = qkv[:, :, 1].transpose(0, 2, 1, 3)
        v = qkv[:, :, 2].transpose(0, 2, 1, 3)
        a = attention(q, k, v, causal=True, out_dtype=mm_dtype)
        a2 = a.transpose(0, 2, 1, 3).reshape(B * T, D)
        x2 = matmul(a2, bp['wo'], bias=bp['bo'], residual=x2,
                    out_dtype=jnp.float32, mm_dtype=mm_dtype)

        # ---- cross attention over audio features ----
        qc = ln_matmul(x2, bp['lnc_g'], bp['lnc_b'], bp['wq_c'], bp['bq_c'],
                       activation=None, out_dtype=mm_dtype)
        kv = matmul(xa2, bp['wkv_c'], bias=bp['bkv_c'],
                    out_dtype=mm_dtype, mm_dtype=mm_dtype)
        kv = kv.reshape(B, S, 2, H, hd)
        kc = kv[:, :, 0].transpose(0, 2, 1, 3)
        vc = kv[:, :, 1].transpose(0, 2, 1, 3)
        qc4 = qc.reshape(B, T, H, hd).transpose(0, 2, 1, 3)
        ac = attention(qc4, kc, vc, causal=False, out_dtype=mm_dtype)
        ac2 = ac.transpose(0, 2, 1, 3).reshape(B * T, D)
        x2 = matmul(ac2, bp['wo_c'], bias=bp['bo_c'], residual=x2,
                    out_dtype=jnp.float32, mm_dtype=mm_dtype)

        # ---- MLP ----
        h1 = ln_matmul(x2, bp['ln2_g'], bp['ln2_b'], bp['w1'], bp['b1'],
                       activation="gelu", out_dtype=mm_dtype)
        x2 = matmul(h1, bp['w2'], bias=bp['b2'], residual=x2,
                    out_dtype=jnp.float32, mm_dtype=mm_dtype)

    # final LayerNorm + vocab projection (weight tying with the embedding table)
    xln = layernorm(x2, pk['ln_g'], pk['ln_b'], out_dtype=mm_dtype)
    logits = matmul(xln, pk['emb_T'], out_dtype=jnp.float32, mm_dtype=mm_dtype)
    return logits.reshape(B, T, -1)


# -------------------------------- params & packing ---------------------------------

def init_params(key, n_vocab, n_ctx, n_state, n_head, n_layer):
    ks = iter(jax.random.split(key, 2 + 18 * n_layer))

    def w(shape, scale=0.02):
        return jax.random.normal(next(ks), shape, jnp.float32) * scale

    D = n_state
    p = {
        'tok_emb': w((n_vocab, D)),
        'pos_emb': w((n_ctx, D)),
        'ln_g': jnp.ones((1, D), jnp.float32),
        'ln_b': jnp.zeros((1, D), jnp.float32),
        'blocks': [],
    }
    for _ in range(n_layer):
        p['blocks'].append(dict(
            ln1_g=jnp.ones((1, D), jnp.float32), ln1_b=jnp.zeros((1, D), jnp.float32),
            wq=w((D, D)), bq=w((1, D)),
            wk=w((D, D)),                       # key has no bias
            wv=w((D, D)), bv=w((1, D)),
            wo=w((D, D)), bo=w((1, D)),
            lnc_g=jnp.ones((1, D), jnp.float32), lnc_b=jnp.zeros((1, D), jnp.float32),
            wq_c=w((D, D)), bq_c=w((1, D)),
            wk_c=w((D, D)),
            wv_c=w((D, D)), bv_c=w((1, D)),
            wo_c=w((D, D)), bo_c=w((1, D)),
            ln2_g=jnp.ones((1, D), jnp.float32), ln2_b=jnp.zeros((1, D), jnp.float32),
            w1=w((D, 4 * D)), b1=w((1, 4 * D)),
            w2=w((4 * D, D)), b2=w((1, D)),
        ))
    return p


def pack_params(p, n_head, mm_dtype):
    """Pack QKV / cross-KV weights, fold the softmax scale into Wq, cast to mm_dtype."""
    D = p['tok_emb'].shape[1]
    hd = D // n_head
    s = float(hd) ** (-0.5)      # == (hd**-0.25 on q) * (hd**-0.25 on k)
    zeros_b = jnp.zeros((1, D), jnp.float32)
    pk = {
        'tok_emb': p['tok_emb'],
        'pos_emb': p['pos_emb'],
        'ln_g': p['ln_g'], 'ln_b': p['ln_b'],
        'emb_T': p['tok_emb'].T.astype(mm_dtype),
        'blocks': [],
    }
    for bp in p['blocks']:
        pk['blocks'].append(dict(
            ln1_g=bp['ln1_g'], ln1_b=bp['ln1_b'],
            wqkv=jnp.concatenate([bp['wq'] * s, bp['wk'], bp['wv']], axis=1).astype(mm_dtype),
            bqkv=jnp.concatenate([bp['bq'] * s, zeros_b, bp['bv']], axis=1),
            wo=bp['wo'].astype(mm_dtype), bo=bp['bo'],
            lnc_g=bp['lnc_g'], lnc_b=bp['lnc_b'],
            wq_c=(bp['wq_c'] * s).astype(mm_dtype), bq_c=bp['bq_c'] * s,
            wkv_c=jnp.concatenate([bp['wk_c'], bp['wv_c']], axis=1).astype(mm_dtype),
            bkv_c=jnp.concatenate([zeros_b, bp['bv_c']], axis=1),
            wo_c=bp['wo_c'].astype(mm_dtype), bo_c=bp['bo_c'],
            ln2_g=bp['ln2_g'], ln2_b=bp['ln2_b'],
            w1=bp['w1'].astype(mm_dtype), b1=bp['b1'],
            w2=bp['w2'].astype(mm_dtype), b2=bp['b2'],
        ))
    return pk


# -------------------------- pure-JAX reference (for checking) ----------------------

def _ref_attention(q, k, v, n_head, mask=None):
    B, T, D = q.shape
    S = k.shape[1]
    hd = D // n_head
    scale = float(hd) ** (-0.25)
    q = q.reshape(B, T, n_head, hd).transpose(0, 2, 1, 3) * scale
    k = k.reshape(B, S, n_head, hd).transpose(0, 2, 3, 1) * scale
    v = v.reshape(B, S, n_head, hd).transpose(0, 2, 1, 3)
    qk = q @ k
    if mask is not None:
        qk = qk + mask[:T, :T]
    w = jax.nn.softmax(qk, axis=-1)
    return (w @ v).transpose(0, 2, 1, 3).reshape(B, T, D)


def ref_forward(tokens, xa, p, n_head):
    B, T = tokens.shape
    x = p['tok_emb'][tokens] + p['pos_emb'][None, :T]
    mask = jnp.where(jnp.arange(T)[None, :] > jnp.arange(T)[:, None], -jnp.inf, 0.0)
    for bp in p['blocks']:
        xl = _layernorm(x, bp['ln1_g'], bp['ln1_b'])
        q = xl @ bp['wq'] + bp['bq']
        k = xl @ bp['wk']
        v = xl @ bp['wv'] + bp['bv']
        x = x + _ref_attention(q, k, v, n_head, mask) @ bp['wo'] + bp['bo']
        xc = _layernorm(x, bp['lnc_g'], bp['lnc_b'])
        qc = xc @ bp['wq_c'] + bp['bq_c']
        kc = xa @ bp['wk_c']
        vc = xa @ bp['wv_c'] + bp['bv_c']
        x = x + _ref_attention(qc, kc, vc, n_head, None) @ bp['wo_c'] + bp['bo_c']
        xm = _layernorm(x, bp['ln2_g'], bp['ln2_b'])
        x = x + _gelu(xm @ bp['w1'] + bp['b1']) @ bp['w2'] + bp['b2']
    x = _layernorm(x, p['ln_g'], p['ln_b'])
    return x @ p['tok_emb'].T


# ------------------------------------- main ----------------------------------------

if __name__ == "__main__":
    B, n_vocab, n_ctx, n_audio_ctx, n_state, n_head, n_layer = 2, 128, 8, 16, 32, 4, 2

    key = jax.random.PRNGKey(0)
    k_tok, k_xa, k_p = jax.random.split(key, 3)
    tokens = jax.random.randint(k_tok, (B, n_ctx), 0, n_vocab)
    xa = jax.random.normal(k_xa, (B, n_audio_ctx, n_state), jnp.float32)
    params = init_params(k_p, n_vocab, n_ctx, n_state, n_head, n_layer)

    ref = ref_forward(tokens, xa, params, n_head)

    # f32 matmul path: strict numerical check against the pure-JAX reference.
    pk32 = pack_params(params, n_head, jnp.float32)
    out32 = jax.block_until_ready(
        text_decoder_forward(tokens, xa, pk32, n_head, mm_dtype=jnp.float32))
    assert out32.shape == (B, n_ctx, n_vocab), out32.shape
    d32 = float(jnp.max(jnp.abs(out32 - ref)))
    assert d32 < 2e-3, f"f32 mismatch vs reference: {d32}"

    # bf16 matmul path (performance configuration): looser tolerance.
    pk16 = pack_params(params, n_head, jnp.bfloat16)
    out16 = jax.block_until_ready(
        text_decoder_forward(tokens, xa, pk16, n_head, mm_dtype=jnp.bfloat16))
    assert out16.shape == (B, n_ctx, n_vocab), out16.shape
    d16 = float(jnp.max(jnp.abs(out16 - ref)))
    assert d16 < 3e-2, f"bf16 mismatch vs reference: {d16}"

    print("KERNEL_OK")
</pallas_src>

<mosaic_0001>
module attributes {stable_mosaic.version = 11 : i64} {
  func.func @_ln_matmul_kernel(%arg0: i32, %arg1: i32, %arg2: memref<16x32xf32, #tpu.memory_space<vmem>>, %arg3: memref<1x32xf32, #tpu.memory_space<vmem>>, %arg4: memref<1x32xf32, #tpu.memory_space<vmem>>, %arg5: memref<32x96xf32, #tpu.memory_space<vmem>>, %arg6: memref<1x96xf32, #tpu.memory_space<vmem>>, %arg7: memref<16x96xf32, #tpu.memory_space<vmem>>) attributes {dimension_semantics = [#tpu.dimension_semantics<parallel>, #tpu.dimension_semantics<parallel>], iteration_bounds = array<i64: 1, 1>, scalar_prefetch = 0 : i64, scratch_operands = 0 : i64, tpu.core_type = #tpu.core_type<tc>, window_params = [{transform_indices = @transform_0, window_bounds = array<i64: 16, 32>}, {pipeline_mode = #tpu.pipeline_mode<synchronous>, transform_indices = @transform_1, window_bounds = array<i64: 1, 32>}, {pipeline_mode = #tpu.pipeline_mode<synchronous>, transform_indices = @transform_2, window_bounds = array<i64: 1, 32>}, {transform_indices = @transform_3, window_bounds = array<i64: 32, 96>}, {transform_indices = @transform_4, window_bounds = array<i64: 1, 96>}, {transform_indices = @transform_5, window_bounds = array<i64: 16, 96>}]} {
    %c0 = arith.constant 0 : index
    %c0_0 = arith.constant 0 : index
    %0 = vector.load %arg2[%c0, %c0_0] : memref<16x32xf32, #tpu.memory_space<vmem>>, vector<16x32xf32>
    %c0_1 = arith.constant 0 : index
    %c0_2 = arith.constant 0 : index
    %1 = vector.load %arg3[%c0_1, %c0_2] : memref<1x32xf32, #tpu.memory_space<vmem>>, vector<1x32xf32>
    %c0_3 = arith.constant 0 : index
    %c0_4 = arith.constant 0 : index
    %2 = vector.load %arg4[%c0_3, %c0_4] : memref<1x32xf32, #tpu.memory_space<vmem>>, vector<1x32xf32>
    %cst = arith.constant dense<0.000000e+00> : vector<16xf32>
    %3 = vector.multi_reduction <add>, %0, %cst [1] : vector<16x32xf32> to vector<16xf32>
    %4 = vector.shape_cast %3 : vector<16xf32> to vector<16x1xf32>
    %cst_5 = arith.constant 3.200000e+01 : f32
    %5 = vector.broadcast %cst_5 : f32 to vector<16x1xf32>
    %6 = arith.divf %4, %5 : vector<16x1xf32>
    %7 = vector.broadcast %6 : vector<16x1xf32> to vector<16x32xf32>
    %8 = arith.subf %0, %7 : vector<16x32xf32>
    %9 = arith.mulf %8, %8 : vector<16x32xf32>
    %cst_6 = arith.constant dense<0.000000e+00> : vector<16xf32>
    %10 = vector.multi_reduction <add>, %9, %cst_6 [1] : vector<16x32xf32> to vector<16xf32>
    %11 = vector.shape_cast %10 : vector<16xf32> to vector<16x1xf32>
    %cst_7 = arith.constant 3.200000e+01 : f32
    %12 = vector.broadcast %cst_7 : f32 to vector<16x1xf32>
    %13 = arith.divf %11, %12 : vector<16x1xf32>
    %14 = vector.broadcast %6 : vector<16x1xf32> to vector<16x32xf32>
    %15 = arith.subf %0, %14 : vector<16x32xf32>
    %cst_8 = arith.constant 9.99999974E-6 : f32
    %16 = vector.broadcast %cst_8 : f32 to vector<16x1xf32>
    %17 = arith.addf %13, %16 : vector<16x1xf32>
    %18 = math.rsqrt %17 : vector<16x1xf32>
    %19 = vector.broadcast %18 : vector<16x1xf32> to vector<16x32xf32>
    %20 = arith.mulf %15, %19 : vector<16x32xf32>
    %21 = vector.broadcast %1 : vector<1x32xf32> to vector<16x32xf32>
    %22 = arith.mulf %20, %21 : vector<16x32xf32>
    %23 = vector.broadcast %2 : vector<1x32xf32> to vector<16x32xf32>
    %24 = arith.addf %22, %23 : vector<16x32xf32>
    %c0_9 = arith.constant 0 : index
    %c0_10 = arith.constant 0 : index
    %25 = vector.load %arg5[%c0_9, %c0_10] : memref<32x96xf32, #tpu.memory_space<vmem>>, vector<32x96xf32>
    %cst_11 = arith.constant dense<0.000000e+00> : vector<16x96xf32>
    %26 = tpu.matmul %24, %25, %cst_11 {dimension_numbers = #tpu.dot_dimension_numbers<[1], [0], [0], [1], [0, 0, 1, 1], [], []>} : vector<16x32xf32>, vector<32x96xf32>, vector<16x96xf32> -> vector<16x96xf32>
    %c0_12 = arith.constant 0 : index
    %c0_13 = arith.constant 0 : index
    %27 = vector.load %arg6[%c0_12, %c0_13] : memref<1x96xf32, #tpu.memory_space<vmem>>, vector<1x96xf32>
    %28 = vector.broadcast %27 : vector<1x96xf32> to vector<16x96xf32>
    %29 = arith.addf %26, %28 : vector<16x96xf32>
    %c0_14 = arith.constant 0 : index
    %c0_15 = arith.constant 0 : index
    %30 = vector.load %arg7[%c0_14, %c0_15] : memref<16x96xf32, #tpu.memory_space<vmem>>, vector<16x96xf32>
    tpu.vector_store %arg7[%c0_14, %c0_15], %29 {strides = array<i32>} : memref<16x96xf32, #tpu.memory_space<vmem>>, vector<16x96xf32>,
    return
  }
  func.func @transform_0(%arg0: i32, %arg1: i32) -> (i32, i32) {
    %c0_i32 = arith.constant 0 : i32
    %c0_i32_0 = arith.constant 0 : i32
    return %arg0, %c0_i32 : i32, i32
  }
  func.func @transform_1(%arg0: i32, %arg1: i32) -> (i32, i32) {
    %c0_i32 = arith.constant 0 : i32
    %c0_i32_0 = arith.constant 0 : i32
    %c0_i32_1 = arith.constant 0 : i32
    return %c0_i32, %c0_i32_0 : i32, i32
  }
  func.func @transform_2(%arg0: i32, %arg1: i32) -> (i32, i32) {
    %c0_i32 = arith.constant 0 : i32
    %c0_i32_0 = arith.constant 0 : i32
    %c0_i32_1 = arith.constant 0 : i32
    return %c0_i32, %c0_i32_0 : i32, i32
  }
  func.func @transform_3(%arg0: i32, %arg1: i32) -> (i32, i32) {
    %c0_i32 = arith.constant 0 : i32
    %c0_i32_0 = arith.constant 0 : i32
    return %c0_i32, %arg1 : i32, i32
  }
  func.func @transform_4(%arg0: i32, %arg1: i32) -> (i32, i32) {
    %c0_i32 = arith.constant 0 : i32
    %c0_i32_0 = arith.constant 0 : i32
    return %c0_i32, %arg1 : i32, i32
  }
  func.func @transform_5(%arg0: i32, %arg1: i32) -> (i32, i32) {
    %c0_i32 = arith.constant 0 : i32
    return %arg0, %arg1 : i32, i32
  }
}

</mosaic_0001>

<bundles_post_ra>
// kernel: tpu_custom_call.1
= control target key start
LH: loop header
LB: loop body
LE: loop exit
PB: predicated region body
PF: predicated region fallthrough
CT: control target
= control target key end

     0   :  { %10 = vsyncpa [#allocation3], 0  ;;  %s416_s0 = inlined_call_operand.hbm [shape: f32[16,32], index: 0, kind: input, shape index: {}]   ;;  %s417_s1 = inlined_call_operand.vmem [shape: f32[1,32], index: 1, kind: input, shape index: {}]   ;;  %s418_s2 = inlined_call_operand.vmem [shape: f32[1,32], index: 2, kind: input, shape index: {}]   ;;  %s419_s3 = inlined_call_operand.hbm [shape: f32[32,96], index: 3, kind: input, shape index: {}]   ;;  %s420_s4 = inlined_call_operand.vmem [shape: f32[1,96], index: 4, kind: input, shape index: {}]   ;;  %s421_s5 = inlined_call_operand.hbm [shape: f32[16,96], index: 5, kind: output, shape index: {}]  }
   0x1   :  { %11 = vsyncpa [#allocation6], 0 }
   0x2   :  { %12 = vsyncpa [#allocation4], 0  ;;  %s321_s18 = smov [#allocation2]   ;;  %s249_s22 = scalar_lea.hbm %s416_s0, 256 }
   0x3   :  { %s18_s19 = sshll.u32 %s321_s18, 4  ;;  %p250_p0 = scmp.ne.s32.totalorder %s416_s0, %s249_s22  ;;  %s19_s19 = int_to_ptr.vmem [resolvable:$true] %s18_s19 }
   0x4   :  { %p253_p1 = scmp.lt.u32.totalorder %s249_s22, %s416_s0 }
   0x6   :  { %p255_p2 = pnand %p253_p1, %p250_p0 }
   0x8   :  { %258 = shalt.err (!%p255_p2)
}
   0x9   :  { %s259_s27 = scalar_lea.vmem %s19_s19, 256  ;;  %p264_p4 = scmp.lt.s32.totalorder %s19_s19, %s19_s19 }
   0xa   :  { %p260_p3 = scmp.ne.s32.totalorder %s19_s19, %s259_s27  ;;  %p265_p5 = scmp.lt.s32.totalorder %s259_s27, %s259_s27 }
   0xc   :  { %p266_p6 = por %p265_p5, %p264_p4 }
   0xe   :  { %p267_p7 = pnand %p266_p6, %p260_p3 }
  0x10   :  { %270 = shalt.err (!%p267_p7)
}
  0x11   :  { %s322_s28 = smov 128   ;;  %s323_s29 = smov 8  }
  0x12   :  { %24 = dma.hbm_to_vmem [thread:$0]  %s416_s0, 256, %s19_s19, [#allocation3], %s322_s28, %s322_s28, %s323_s29  }
  0x13   :  { %s324_s7 = smov [#allocation5]   ;;  %s271_s11 = scalar_lea.hbm %s419_s3, 512 }
  0x14   :  { %s34_s8 = sshll.u32 %s324_s7, 4  ;;  %p272_p8 = scmp.ne.s32.totalorder %s419_s3, %s271_s11  ;;  %s35_s8 = int_to_ptr.vmem [resolvable:$true] %s34_s8 }
  0x15   :  { %p275_p9 = scmp.lt.u32.totalorder %s271_s11, %s419_s3 }
  0x17   :  { %p277_p10 = pnand %p275_p9, %p272_p8 }
  0x19   :  { %280 = shalt.err (!%p277_p10)
}
  0x1a   :  { %s281_s16 = scalar_lea.vmem %s35_s8, 512  ;;  %p286_p12 = scmp.lt.s32.totalorder %s35_s8, %s35_s8 }
  0x1b   :  { %p282_p11 = scmp.ne.s32.totalorder %s35_s8, %s281_s16  ;;  %p287_p13 = scmp.lt.s32.totalorder %s281_s16, %s281_s16 }
  0x1d   :  { %p288_p0 = por %p287_p13, %p286_p12 }
  0x1f   :  { %p289_p1 = pnand %p288_p0, %p282_p11 }
  0x21   :  { %292 = shalt.err (!%p289_p1)
}
  0x22   :  { %40 = dma.hbm_to_vmem [thread:$0]  %s419_s3, 512, %s35_s8, [#allocation6], %s322_s28, %s322_s28, %s323_s29  }
  0x23   :  { %315 = dma.done.wait [#allocation3], 256  }
  0x24   :  { %316 = vsyncadd [#allocation3], 4294967040 }
  0x25   :  { %317 = dma.done.wait [#allocation6], 512  }
  0x26   :  { %318 = vsyncadd [#allocation6], 4294966784  ;;  %vm53_vm0 = vcmask 261120   ;;  %v49_v0 = vld [vmem:[#allocation2] sm:$0xff]  ;;  %v50_v1 = vld [vmem:[#allocation2 + $0x8] sm:$0xff]  ;;  %vm189_vm1 = vcmask 785408  }
  0x27   :  { %v54_v2 = vsel %vm53_vm0, %v49_v0, 0.0  ;;  %v57_v3 = vsel %vm53_vm0, %v50_v1, 0.0  ;;  %v97_v14 = vld [vmem:[#allocation5] sm:$0xff]  ;;  %v98_v15 = vld [vmem:[#allocation5 + $0x8] sm:$0xff]  ;;  %v99_v16 = vld [vmem:[#allocation5 + $0x10] sm:$0xff] }
  0x28   :  { %55 = vadd.xlane.f32.xlu0 %v54_v2  ;;  %v232_v17 = vpack.c.bf16 %v98_v15, %v97_v14  ;;  %v100_v18 = vld [vmem:[#allocation5 + $0x18] sm:$0xff]  ;;  %v210_v27 = vld [vmem:[%s417_s1] ss:$0 sm:$0xff]  ;;  %s325_s1 = smov [#allocation7]  }
  0x29   :  { %v236_v19 = vpack.c.bf16 %v100_v18, %v99_v16  ;;  %v211_v29 = vld [vmem:[%s418_s2] ss:$0 sm:$0xff]  ;;  %s197_s23 = sshll.u32 %s325_s1, 4  ;;  %s198_s23 = int_to_ptr.vmem [resolvable:$true] %s197_s23 }
  0x2a   :  { %233 = vmatprep.subr.bf16.mxu0 %v232_v17  ;;  %v212_v36 = vld [vmem:[%s420_s4] ss:$0 sm:$0xff]  ;;  %s293_s2 = scalar_lea.vmem %s198_s23, 256  ;;  %p298_p3 = scmp.lt.s32.totalorder %s198_s23, %s198_s23 }
  0x2b   :  { %235 = vmatpush3.bf16.msra.mxu0 %v232_v17  ;;  %p294_p2 = scmp.ne.s32.totalorder %s198_s23, %s293_s2  ;;  %p299_p4 = scmp.lt.s32.totalorder %s293_s2, %s293_s2 }
  0x2c   :  { %58 = vadd.xlane.f32.xlu0 %v57_v3  ;;  %237 = vmatprep.subr.bf16.mxu0 %v236_v19 }
  0x2d   :  { %p300_p5 = por %p299_p4, %p298_p3 }
  0x2f   :  { %239 = vmatpush3.bf16.msra.mxu0 %v236_v19  ;;  %p301_p6 = pnand %p300_p5, %p294_p2 }
  0xb5   :  { %v56_v4 = vpop.xlane.xlu0 %55 }
  0xb6   :  { %v61_v5 = vmul.f32 0.03125, %v56_v4 }
  0xb8   :  { %v63_v6 = vsub.f32 %v49_v0, %v61_v5 }
  0xb9   :  { %v59_v7 = vpop.xlane.xlu0 %58 }
  0xba   :  { %v62_v8 = vmul.f32 0.03125, %v59_v7  ;;  %v65_v9 = vmul.f32 %v63_v6, %v63_v6 }
  0xbc   :  { %v64_v10 = vsub.f32 %v50_v1, %v62_v8  ;;  %v67_v11 = vsel %vm53_vm0, %v65_v9, 0.0 }
  0xbd   :  { %68 = vadd.xlane.f32.xlu1 %v67_v11 }
  0xbe   :  { %v66_v12 = vmul.f32 %v64_v10, %v64_v10 }
  0xc0   :  { %v70_v13 = vsel %vm53_vm0, %v66_v12, 0.0 }
  0xc1   :  { %71 = vadd.xlane.f32.xlu1 %v70_v13 }
 0x14a   :  { %v69_v20 = vpop.xlane.xlu1 %68 }
 0x14b   :  { %v73_v21 = vmul.f32 0.03125, %v69_v20 }
 0x14d   :  { %v75_v22 = vadd.f32 1e-05, %v73_v21 }
 0x14e   :  { %v72_v23 = vpop.xlane.xlu1 %71 }
 0x14f   :  { %245 = vrsqrt.f32 %v75_v22  ;;  %v74_v24 = vmul.f32 0.03125, %v72_v23 }
 0x151   :  { %v76_v25 = vadd.f32 1e-05, %v74_v24 }
 0x153   :  { %247 = vrsqrt.f32 %v76_v25 }
 0x159   :  { %v246_v26 = vpop.eup %245 }
 0x15a   :  { %v79_v28 = vmul.f32 %v246_v26, %v63_v6 }
 0x15c   :  { %v87_v30 = vmul.f32 %v210_v27, %v79_v28 }
 0x15d   :  { %v248_v31 = vpop.eup %247 }
 0x15e   :  { %v80_v32 = vmul.f32 %v248_v31, %v64_v10  ;;  %v95_v33 = vadd.f32 %v211_v29, %v87_v30 }
 0x160   :  { %v88_v34 = vmul.f32 %v210_v27, %v80_v32  ;;  %229 = vmatprep.mubr.msk.f32.mxu0 %vm53_vm0, %v95_v33 }
 0x162   :  { %v96_v35 = vadd.f32 %v211_v29, %v88_v34 }
 0x164   :  { %230 = vmatmul.mubr.msk.f32.vlgmr.msra.gmra.mrb[0].mxu0 %vm53_vm0, %v96_v35 }
 0x237   :  { %v231_v37 = vpop.f32.mrb[0].mxu0 }
 0x238   :  { %v186_v38 = vadd.f32 %v231_v37, %v212_v36  ;;  %v180_v39 = vpop.f32.mrb[1].mxu0 }
 0x239   :  { %v181_v40 = vadd.f32 %v212_v36, %v180_v39 }
 0x23a   :  { %191 = vst.msk [vmem:[#allocation7 + $0x8] sm:$0xff] %vm189_vm1, %v186_v38 }
 0x23b   :  { %190 = vst.msk [vmem:[#allocation7] sm:$0xff] %vm189_vm1, %v181_v40 }
 0x23c   :  { %304 = shalt.err (!%p301_p6)
}
 0x23d   :  { %s305_s4 = scalar_lea.hbm %s421_s5, 256 }
 0x23e   :  { %p306_p7 = scmp.ne.s32.totalorder %s421_s5, %s305_s4  ;;  %p309_p8 = scmp.lt.u32.totalorder %s305_s4, %s421_s5 }
 0x240   :  { %p311_p9 = pnand %p309_p8, %p306_p7 }
 0x242   :  { %314 = shalt.err (!%p311_p9)
}
 0x243   :  { %203 = dma.vmem_to_hbm [thread:$0]  %s198_s23, 256, %s421_s5, [#allocation4], %s322_s28, %s322_s28, %s323_s29  }
 0x244   :  { %319 = dma.done.wait [#allocation4], 256  }
 0x245   :  { %320 = vsyncadd [#allocation4], 4294967040 }
 0x246   :  { %207 = vsyncpa [#allocation3], 1 }
 0x247   :  { %208 = vsyncpa [#allocation6], 1 }
 0x248   :  { %209 = vsyncpa [#allocation4], 1 }

</bundles_post_ra>
